<compile_context>
chip_gen: v6e
topology: v6e:2x2x1
jax: 0.10.0
libtpu: 0.0.40
codegen_flags: <defaults>
</compile_context>

<pallas_src>
import functools

import jax
import jax.numpy as jnp
from jax.experimental import pallas as pl
from jax.experimental.pallas import tpu as pltpu

_TARGET_ROWS = 512          # target M = tile_h * W8 rows fed to each MXU matmul
_POOL_CHUNK_CAP = 8192      # rows per pool-kernel grid step


def _round_up(v, m):
    return ((v + m - 1) // m) * m


def _vmem_limit_bytes(frac=0.8, fallback=64 * 1024 * 1024):
    """Generation-aware VMEM budget: ~80% of physical per-core VMEM."""
    try:
        cap = getattr(pltpu.get_tpu_info(), "vmem_capacity_bytes", None) or fallback
    except Exception:
        cap = fallback
    return int(cap * frac)


# ----------------------------------------------------------------------------
# Fused ASPP kernel: 1x1 branch + dilated 3x3 branches + projection + ReLU.
# Grid = (batch, row-tile, branch).  One branch's weights in VMEM at a time.
# ----------------------------------------------------------------------------
def _make_fused_kernel(rates, d_max, tile_h, W8, Cin, Cp, n_h, win_rows, Hp):
    R = len(rates)
    M = tile_h * W8
    n_b = 1 + R

    def kernel(x_rows, w0_ref, b0_ref, p0_ref, wa_ref, ba_ref, pa_ref,
               pool_ref, bproj_ref, o_ref, win_buf, proj_acc, dma_sems):
        n = pl.program_id(0)
        h = pl.program_id(1)
        b = pl.program_id(2)
        slot = h % 2

        def window_copy(src_row, s):
            return pltpu.make_async_copy(
                x_rows.at[pl.ds(src_row, win_rows)],
                win_buf.at[s],
                dma_sems.at[s])

        # ---- manual double-buffered halo-window DMA over the row-tile axis ----
        # Window h is fetched/waited once (branch step 0) and reused by every
        # branch step; the h+1 prefetch overlaps the whole branch compute of h.
        @pl.when((b == 0) & (h == 0))
        def _():
            window_copy(n * Hp, 0).start()                   # batch-start prime

        @pl.when(b == 0)
        def _():
            window_copy(0, slot).wait()

        @pl.when((b == 0) & (h + 1 < n_h))
        def _():
            window_copy(n * Hp + (h + 1) * tile_h, 1 - slot).start()

        # ---- branch 0: 1x1 conv (+ pooled-branch constant), init proj acc ----
        @pl.when(b == 0)
        def _():
            rows = win_buf[slot, pl.ds(d_max, tile_h), :, :]
            xm = rows[:, d_max:d_max + W8, :].reshape(M, Cin)
            acc = jnp.dot(xm, w0_ref[...], preferred_element_type=jnp.float32)
            br = jnp.maximum(acc + b0_ref[...], 0.0).astype(jnp.bfloat16)
            proj_acc[...] = (jnp.dot(br, p0_ref[...],
                                     preferred_element_type=jnp.float32)
                             + pool_ref[0])

        # ---- atrous branches: 9 shifted matmuls; only branch b's weights are
        #      resident (streamed via the branch grid axis) ---------------------
        for i, r in enumerate(rates):
            @pl.when(b == i + 1)
            def _(r=r):
                acc = None
                for ky in range(3):
                    rows = win_buf[slot, pl.ds(d_max - r + ky * r, tile_h), :, :]
                    for kx in range(3):
                        cs = d_max - r + kx * r
                        xm = rows[:, cs:cs + W8, :].reshape(M, Cin)
                        part = jnp.dot(xm, wa_ref[0, ky * 3 + kx],
                                       preferred_element_type=jnp.float32)
                        acc = part if acc is None else acc + part
                br = jnp.maximum(acc + ba_ref[0], 0.0).astype(jnp.bfloat16)
                proj_acc[...] += jnp.dot(br, pa_ref[0],
                                         preferred_element_type=jnp.float32)

        # ---- last branch: projection bias + ReLU, single lane-dense HBM write -
        @pl.when(b == n_b - 1)
        def _():
            out = jnp.maximum(proj_acc[...] + bproj_ref[...], 0.0)
            o_ref[...] = out.reshape(1, tile_h, W8, Cp).astype(o_ref.dtype)

    return kernel


def aspp_fused(x_pad, w0, b0, p0, wa_all, ba_all, pa_all, pool_contrib, b_proj,
               *, H_t, W8, tile_h, d_max, rates, out_dtype):
    N, Hp, Wp, Cin = x_pad.shape
    Cout = w0.shape[1]
    Cp = p0.shape[1]
    R = len(rates)
    n_h = H_t // tile_h
    n_b = 1 + R
    win_rows = tile_h + 2 * d_max
    M = tile_h * W8

    # Merge (N, Hp) so the manual DMA only needs a single dynamic row offset.
    x_rows = x_pad.reshape(N * Hp, Wp, Cin)

    kernel = _make_fused_kernel(rates, d_max, tile_h, W8, Cin, Cp,
                                n_h, win_rows, Hp)

    def const_spec(shape):
        return pl.BlockSpec(shape, lambda n, h, b: (0,) * len(shape))

    def branch_idx(b):
        return jnp.maximum(b - 1, 0)     # branch 0 doesn't read these blocks

    in_specs = [
        pl.BlockSpec(memory_space=pl.ANY),                                # x (HBM)
        const_spec((Cin, Cout)),                                          # w0 (scale-folded)
        const_spec((1, Cout)),                                            # b0
        const_spec((Cout, Cp)),                                           # p0 (scale-folded)
        pl.BlockSpec((1, 9, Cin, Cout), lambda n, h, b: (branch_idx(b), 0, 0, 0)),
        pl.BlockSpec((1, 1, Cout), lambda n, h, b: (branch_idx(b), 0, 0)),
        pl.BlockSpec((1, Cout, Cp), lambda n, h, b: (branch_idx(b), 0, 0)),
        pl.BlockSpec((1, 1, Cp), lambda n, h, b: (n, 0, 0)),              # pool contrib
        const_spec((1, Cp)),                                              # proj bias
    ]

    return pl.pallas_call(
        kernel,
        out_shape=jax.ShapeDtypeStruct((N, H_t, W8, Cp), out_dtype),
        grid=(N, n_h, n_b),
        in_specs=in_specs,
        out_specs=pl.BlockSpec((1, tile_h, W8, Cp), lambda n, h, b: (n, h, 0, 0)),
        scratch_shapes=[
            pltpu.VMEM((2, win_rows, Wp, Cin), jnp.bfloat16),   # halo windows
            pltpu.VMEM((M, Cp), jnp.float32),                   # projection acc
            pltpu.SemaphoreType.DMA((2,)),
        ],
        compiler_params=pltpu.CompilerParams(
            dimension_semantics=("parallel", "arbitrary", "arbitrary"),
            vmem_limit_bytes=_vmem_limit_bytes()),
    )(x_rows, w0, b0, p0, wa_all, ba_all, pa_all, pool_contrib, b_proj)


# ----------------------------------------------------------------------------
# Pooling branch: tiled global average pool + 1x1 conv + bias + ReLU, then the
# projection slice -> per-batch [N, 1, Cp] additive contribution.
# ----------------------------------------------------------------------------
def _pool_kernel(x_ref, wp_ref, bp_ref, pp_ref, o_ref, acc_ref, *,
                 inv_hw, valid_rows, chunk):
    c = pl.program_id(1)

    @pl.when(c == 0)
    def _():
        acc_ref[...] = jnp.zeros_like(acc_ref)

    # Mask the (possibly stale) tail of a partial last block, then reduce the
    # chunk with sublane-aligned VALU adds into an (8, Cin) running sum.
    row = c * chunk + jax.lax.broadcasted_iota(jnp.int32, (chunk, 1), 0)
    xm = jnp.where(row < valid_rows, x_ref[0].astype(jnp.float32), 0.0)
    acc_ref[...] += jnp.sum(xm.reshape(chunk // 8, 8, -1), axis=0)

    @pl.when(c == pl.num_programs(1) - 1)
    def _():
        total = jnp.sum(acc_ref[...], axis=0, keepdims=True)            # [1, Cin]
        mean = (total * inv_hw).astype(jnp.bfloat16)
        conv = jnp.dot(mean, wp_ref[...], preferred_element_type=jnp.float32)
        act = jnp.maximum(conv + bp_ref[...], 0.0).astype(jnp.bfloat16)  # [1, Cout]
        o_ref[...] = jnp.dot(act, pp_ref[...],
                             preferred_element_type=jnp.float32)[None]   # [1,1,Cp]


def pool_branch(x_flat, wp, bp, pp, *, inv_hw):
    N, HWp, Cin = x_flat.shape
    Cout = wp.shape[1]
    Cp = pp.shape[1]
    chunk = min(_POOL_CHUNK_CAP, _round_up(HWp, 8))
    n_c = (HWp + chunk - 1) // chunk
    kernel = functools.partial(_pool_kernel, inv_hw=inv_hw,
                               valid_rows=HWp, chunk=chunk)
    return pl.pallas_call(
        kernel,
        out_shape=jax.ShapeDtypeStruct((N, 1, Cp), jnp.float32),
        grid=(N, n_c),
        in_specs=[
            pl.BlockSpec((1, chunk, Cin), lambda n, c: (n, c, 0)),
            pl.BlockSpec((Cin, Cout), lambda n, c: (0, 0)),
            pl.BlockSpec((1, Cout), lambda n, c: (0, 0)),
            pl.BlockSpec((Cout, Cp), lambda n, c: (0, 0)),
        ],
        out_specs=pl.BlockSpec((1, 1, Cp), lambda n, c: (n, 0, 0)),
        scratch_shapes=[pltpu.VMEM((8, Cin), jnp.float32)],
        compiler_params=pltpu.CompilerParams(
            dimension_semantics=("parallel", "arbitrary"),
            vmem_limit_bytes=_vmem_limit_bytes()),
    )(x_flat, wp, bp, pp)


# ----------------------------------------------------------------------------
# Glue (weight reshapes / BN folding / parameter setup) in plain JAX.
# ----------------------------------------------------------------------------
def oihw_to_mat(w):
    """[Cout, Cin, kh, kw] -> [kh*kw*Cin, Cout] (tap-major, channel-minor)."""
    return jnp.transpose(w, (2, 3, 1, 0)).reshape(-1, w.shape[0])


def oihw_to_taps(w):
    """[Cout, Cin, 3, 3] -> [9, Cin, Cout] (tap ky-major / kx-minor)."""
    co, ci, kh, kw = w.shape
    return jnp.transpose(w, (2, 3, 1, 0)).reshape(kh * kw, ci, co)


def fold_bn(gamma, beta, running_mean, running_var, eps=1e-5):
    scale = gamma / jnp.sqrt(running_var + eps)
    bias = beta - running_mean * scale
    return scale[None, :], bias[None, :]


def init_params(key, in_channels, atrous_rates, out_channels):
    ks = iter(jax.random.split(key, 64))

    def conv_w(cout, cin, kh, kw):
        return 0.1 * jax.random.normal(next(ks), (cout, cin, kh, kw), jnp.float32)

    def bn(c):
        gamma = 1.0 + 0.1 * jax.random.normal(next(ks), (c,), jnp.float32)
        beta = 0.1 * jax.random.normal(next(ks), (c,), jnp.float32)
        mean = jnp.zeros((c,), jnp.float32)
        var = jnp.ones((c,), jnp.float32)
        return fold_bn(gamma, beta, mean, var)

    p = {}
    p["w0"] = conv_w(out_channels, in_channels, 1, 1)
    p["s0"], p["b0"] = bn(out_channels)
    p["w_atrous"], p["s_atrous"], p["b_atrous"] = [], [], []
    for _ in atrous_rates:
        p["w_atrous"].append(conv_w(out_channels, in_channels, 3, 3))
        s, b = bn(out_channels)
        p["s_atrous"].append(s)
        p["b_atrous"].append(b)
    p["wp"] = conv_w(out_channels, in_channels, 1, 1)
    p["sp"], p["bp"] = bn(out_channels)
    n_branch = 1 + len(atrous_rates) + 1
    p["w_proj"] = conv_w(out_channels, n_branch * out_channels, 1, 1)
    p["s_proj"], p["b_proj"] = bn(out_channels)
    return p


def aspp_forward(x_nchw, params, atrous_rates, out_dtype=jnp.bfloat16):
    rates = tuple(atrous_rates)
    assert len(rates) >= 1, "kernel path expects at least one atrous rate"
    x = jnp.transpose(x_nchw, (0, 2, 3, 1)).astype(jnp.bfloat16)      # NHWC bf16
    N, H, W, Cin = x.shape
    d_max = max(rates)

    # Row-tile size targets M ~ _TARGET_ROWS MXU rows; H / W are padded so the
    # tiling is never degenerate and per-tap sublane merges are layout-preserving.
    W8 = _round_up(W, 8)
    tile_h = max(1, min(H, _TARGET_ROWS // W8))
    H_t = _round_up(H, tile_h)

    x_pad = jnp.pad(x, ((0, 0),
                        (d_max, d_max + (H_t - H)),
                        (d_max, d_max + (W8 - W)),
                        (0, 0)))
    Hp, Wp = x_pad.shape[1], x_pad.shape[2]

    Cout = params["w0"].shape[0]
    n_br = 2 + len(rates)

    # ---- fold the BN scales into the weights (bias + ReLU stay in-kernel) ----
    w0 = (oihw_to_mat(params["w0"]) * params["s0"]).astype(jnp.bfloat16)
    p_full = (oihw_to_mat(params["w_proj"]) * params["s_proj"]).astype(jnp.bfloat16)
    p_slices = [p_full[i * Cout:(i + 1) * Cout] for i in range(n_br)]

    wa_all = jnp.stack([(oihw_to_taps(w) * s).astype(jnp.bfloat16)
                        for w, s in zip(params["w_atrous"], params["s_atrous"])])
    ba_all = jnp.stack(params["b_atrous"])                             # [R,1,Cout]
    pa_all = jnp.stack(p_slices[1:1 + len(rates)])                     # [R,Cout,Cp]

    wp = (oihw_to_mat(params["wp"]) * params["sp"]).astype(jnp.bfloat16)

    # ---- pooled branch, pre-projected; fed from x_pad (zero halo is sum-neutral)
    pool_contrib = pool_branch(x_pad.reshape(N, Hp * Wp, Cin),
                               wp, params["bp"], p_slices[-1],
                               inv_hw=1.0 / float(H * W))              # [N,1,Cp]

    out = aspp_fused(x_pad, w0, params["b0"], p_slices[0],
                     wa_all, ba_all, pa_all, pool_contrib, params["b_proj"],
                     H_t=H_t, W8=W8, tile_h=tile_h, d_max=d_max, rates=rates,
                     out_dtype=out_dtype)                              # [N,H_t,W8,Cp]
    out = out[:, :H, :W, :]
    # TODO(synk): nn.Dropout2d(0.25) is identity in eval mode; training dropout not implemented.
    return jnp.transpose(out, (0, 3, 1, 2))                           # back to NCHW


# ----------------------------------------------------------------------------
# Pure-JAX reference (XLA convs, unfolded BN) sanity check.
# ----------------------------------------------------------------------------
def _r16(a):
    return a.astype(jnp.bfloat16).astype(jnp.float32)


def _ref_conv(x, w, dilation=1, padding=0):
    return jax.lax.conv_general_dilated(
        x, w, window_strides=(1, 1),
        padding=[(padding, padding), (padding, padding)],
        rhs_dilation=(dilation, dilation),
        dimension_numbers=("NCHW", "OIHW", "NCHW"))


def _ref_bn_relu(x, scale, bias):
    return jnp.maximum(x * scale[0][None, :, None, None] + bias[0][None, :, None, None], 0.0)


def aspp_reference(x, p, atrous_rates):
    x = _r16(x)
    N, _, H, W = x.shape
    res = [_ref_bn_relu(_ref_conv(x, _r16(p["w0"])), p["s0"], p["b0"])]
    for i, r in enumerate(atrous_rates):
        res.append(_ref_bn_relu(_ref_conv(x, _r16(p["w_atrous"][i]), dilation=r, padding=r),
                                p["s_atrous"][i], p["b_atrous"][i]))
    pooled = jnp.mean(x, axis=(2, 3), keepdims=True)
    pooled = _ref_bn_relu(_ref_conv(pooled, _r16(p["wp"])), p["sp"], p["bp"])
    res.append(jnp.broadcast_to(pooled, (N, pooled.shape[1], H, W)))
    cat = _r16(jnp.concatenate(res, axis=1))
    return _ref_bn_relu(_ref_conv(cat, _r16(p["w_proj"])), p["s_proj"], p["b_proj"])


# ----------------------------------------------------------------------------
if __name__ == "__main__":
    key = jax.random.PRNGKey(0)
    k_x, k_p = jax.random.split(key)

    N, Cin, H, W = 2, 8, 16, 16
    atrous_rates = (2, 4)
    Cout = 32

    x = jax.random.normal(k_x, (N, Cin, H, W), jnp.float32)
    params = init_params(k_p, Cin, atrous_rates, Cout)

    out = jax.block_until_ready(aspp_forward(x, params, atrous_rates))
    assert out.shape == (N, Cout, H, W)

    ref = jax.block_until_ready(aspp_reference(x, params, atrous_rates))
    out_f32 = out.astype(jnp.float32)
    err = float(jnp.max(jnp.abs(out_f32 - ref)))
    assert jnp.allclose(out_f32, ref, rtol=2e-2, atol=2e-2), err

    print("KERNEL_OK")
</pallas_src>

<mosaic_0001>
module attributes {stable_mosaic.version = 11 : i64} {
  func.func @_pool_kernel(%arg0: i32, %arg1: i32, %arg2: memref<1x576x8xbf16, #tpu.memory_space<vmem>>, %arg3: memref<8x32xbf16, #tpu.memory_space<vmem>>, %arg4: memref<1x32xf32, #tpu.memory_space<vmem>>, %arg5: memref<32x32xbf16, #tpu.memory_space<vmem>>, %arg6: memref<1x1x32xf32, #tpu.memory_space<vmem>>, %arg7: memref<8x8xf32, #tpu.memory_space<vmem>>) attributes {dimension_semantics = [#tpu.dimension_semantics<parallel>, #tpu.dimension_semantics<arbitrary>], iteration_bounds = array<i64: 2, 1>, scalar_prefetch = 0 : i64, scratch_operands = 1 : i64, tpu.core_type = #tpu.core_type<tc>, window_params = [{transform_indices = @transform_0, window_bounds = array<i64: 1, 576, 8>}, {pipeline_mode = #tpu.pipeline_mode<synchronous>, transform_indices = @transform_1, window_bounds = array<i64: 8, 32>}, {pipeline_mode = #tpu.pipeline_mode<synchronous>, transform_indices = @transform_2, window_bounds = array<i64: 1, 32>}, {pipeline_mode = #tpu.pipeline_mode<synchronous>, transform_indices = @transform_3, window_bounds = array<i64: 32, 32>}, {transform_indices = @transform_4, window_bounds = array<i64: 1, 1, 32>}]} {
    %c0_i32 = arith.constant 0 : i32
    %0 = arith.cmpi eq, %arg1, %c0_i32 : i32
    %1 = arith.extui %0 : i1 to i32
    %c0_i32_0 = arith.constant 0 : i32
    %2 = arith.cmpi ne, %1, %c0_i32_0 : i32
    scf.if %2 {
      %cst_11 = arith.constant 0.000000e+00 : f32
      %24 = vector.broadcast %cst_11 : f32 to vector<8x8xf32>
      %c0_12 = arith.constant 0 : index
      %c0_13 = arith.constant 0 : index
      %25 = vector.load %arg7[%c0_12, %c0_13] : memref<8x8xf32, #tpu.memory_space<vmem>>, vector<8x8xf32>
      tpu.vector_store %arg7[%c0_12, %c0_13], %24 {strides = array<i32>} : memref<8x8xf32, #tpu.memory_space<vmem>>, vector<8x8xf32>,
    } else {
    }
    %c576_i32 = arith.constant 576 : i32
    %3 = arith.muli %arg1, %c576_i32 : i32
    %4 = tpu.iota {dimensions = array<i32: 0>} : vector<576x1xi32>
    %5 = vector.broadcast %3 : i32 to vector<576x1xi32>
    %6 = arith.addi %5, %4 : vector<576x1xi32>
    %c576_i32_1 = arith.constant 576 : i32
    %7 = vector.broadcast %c576_i32_1 : i32 to vector<576x1xi32>
    %8 = arith.cmpi slt, %6, %7 : vector<576x1xi32>
    %c0 = arith.constant 0 : index
    %c0_2 = arith.constant 0 : index
    %c0_3 = arith.constant 0 : index
    %9 = vector.load %arg2[%c0, %c0_2, %c0_3] : memref<1x576x8xbf16, #tpu.memory_space<vmem>>, vector<1x576x8xbf16>
    %10 = vector.shape_cast %9 : vector<1x576x8xbf16> to vector<576x8xbf16>
    %11 = arith.extf %10 : vector<576x8xbf16> to vector<576x8xf32>
    %cst = arith.constant 0.000000e+00 : f32
    %12 = vector.shape_cast %8 : vector<576x1xi1> to vector<576x1xi1>
    %13 = vector.broadcast %12 : vector<576x1xi1> to vector<576x8xi1>
    %14 = vector.broadcast %cst : f32 to vector<576x8xf32>
    %15 = arith.select %13, %11, %14 : vector<576x8xi1>, vector<576x8xf32>
    %c0_4 = arith.constant 0 : index
    %c0_5 = arith.constant 0 : index
    %16 = vector.load %arg7[%c0_4, %c0_5] : memref<8x8xf32, #tpu.memory_space<vmem>>, vector<8x8xf32>
    %17 = vector.shape_cast %15 : vector<576x8xf32> to vector<72x8x8xf32>
    %cst_6 = arith.constant dense<0.000000e+00> : vector<8x8xf32>
    %18 = vector.multi_reduction <add>, %17, %cst_6 [0] : vector<72x8x8xf32> to vector<8x8xf32>
    %19 = arith.addf %16, %18 : vector<8x8xf32>
    %c0_7 = arith.constant 0 : index
    %c0_8 = arith.constant 0 : index
    %20 = vector.load %arg7[%c0_7, %c0_8] : memref<8x8xf32, #tpu.memory_space<vmem>>, vector<8x8xf32>
    tpu.vector_store %arg7[%c0_7, %c0_8], %19 {strides = array<i32>} : memref<8x8xf32, #tpu.memory_space<vmem>>, vector<8x8xf32>,
    %c0_i32_9 = arith.constant 0 : i32
    %21 = arith.cmpi eq, %arg1, %c0_i32_9 : i32
    %22 = arith.extui %21 : i1 to i32
    %c0_i32_10 = arith.constant 0 : i32
    %23 = arith.cmpi ne, %22, %c0_i32_10 : i32
    scf.if %23 {
      %c0_11 = arith.constant 0 : index
      %c0_12 = arith.constant 0 : index
      %24 = vector.load %arg7[%c0_11, %c0_12] : memref<8x8xf32, #tpu.memory_space<vmem>>, vector<8x8xf32>
      %cst_13 = arith.constant dense<0.000000e+00> : vector<8xf32>
      %25 = vector.multi_reduction <add>, %24, %cst_13 [0] : vector<8x8xf32> to vector<8xf32>
      %26 = vector.shape_cast %25 : vector<8xf32> to vector<1x8xf32>
      %cst_14 = arith.constant 3.906250e-03 : f32
      %27 = vector.broadcast %cst_14 : f32 to vector<1x8xf32>
      %28 = arith.mulf %26, %27 : vector<1x8xf32>
      %29 = arith.truncf %28 : vector<1x8xf32> to vector<1x8xbf16>
      %c0_15 = arith.constant 0 : index
      %c0_16 = arith.constant 0 : index
      %30 = vector.load %arg3[%c0_15, %c0_16] : memref<8x32xbf16, #tpu.memory_space<vmem>>, vector<8x32xbf16>
      %cst_17 = arith.constant dense<0.000000e+00> : vector<1x32xf32>
      %31 = tpu.matmul %29, %30, %cst_17 {dimension_numbers = #tpu.dot_dimension_numbers<[1], [0], [0], [1], [0, 0, 1, 1], [], []>} : vector<1x8xbf16>, vector<8x32xbf16>, vector<1x32xf32> -> vector<1x32xf32>
      %c0_18 = arith.constant 0 : index
      %c0_19 = arith.constant 0 : index
      %32 = vector.load %arg4[%c0_18, %c0_19] : memref<1x32xf32, #tpu.memory_space<vmem>>, vector<1x32xf32>
      %33 = arith.addf %31, %32 : vector<1x32xf32>
      %cst_20 = arith.constant 0.000000e+00 : f32
      %34 = vector.broadcast %cst_20 : f32 to vector<1x32xf32>
      %35 = arith.maximumf %33, %34 : vector<1x32xf32>
      %36 = arith.truncf %35 : vector<1x32xf32> to vector<1x32xbf16>
      %c0_21 = arith.constant 0 : index
      %c0_22 = arith.constant 0 : index
      %37 = vector.load %arg5[%c0_21, %c0_22] : memref<32x32xbf16, #tpu.memory_space<vmem>>, vector<32x32xbf16>
      %cst_23 = arith.constant dense<0.000000e+00> : vector<1x32xf32>
      %38 = tpu.matmul %36, %37, %cst_23 {dimension_numbers = #tpu.dot_dimension_numbers<[1], [0], [0], [1], [0, 0, 1, 1], [], []>} : vector<1x32xbf16>, vector<32x32xbf16>, vector<1x32xf32> -> vector<1x32xf32>
      %39 = vector.shape_cast %38 : vector<1x32xf32> to vector<1x1x32xf32>
      %c0_24 = arith.constant 0 : index
      %c0_25 = arith.constant 0 : index
      %c0_26 = arith.constant 0 : index
      %40 = vector.load %arg6[%c0_24, %c0_25, %c0_26] : memref<1x1x32xf32, #tpu.memory_space<vmem>>, vector<1x1x32xf32>
      tpu.vector_store %arg6[%c0_24, %c0_25, %c0_26], %39 {strides = array<i32>} : memref<1x1x32xf32, #tpu.memory_space<vmem>>, vector<1x1x32xf32>,
    } else {
    }
    return
  }
  func.func @transform_0(%arg0: i32, %arg1: i32) -> (i32, i32, i32) {
    %c0_i32 = arith.constant 0 : i32
    %c0_i32_0 = arith.constant 0 : i32
    return %arg0, %arg1, %c0_i32 : i32, i32, i32
  }
  func.func @transform_1(%arg0: i32, %arg1: i32) -> (i32, i32) {
    %c0_i32 = arith.constant 0 : i32
    %c0_i32_0 = arith.constant 0 : i32
    %c0_i32_1 = arith.constant 0 : i32
    return %c0_i32, %c0_i32_0 : i32, i32
  }
  func.func @transform_2(%arg0: i32, %arg1: i32) -> (i32, i32) {
    %c0_i32 = arith.constant 0 : i32
    %c0_i32_0 = arith.constant 0 : i32
    %c0_i32_1 = arith.constant 0 : i32
    return %c0_i32, %c0_i32_0 : i32, i32
  }
  func.func @transform_3(%arg0: i32, %arg1: i32) -> (i32, i32) {
    %c0_i32 = arith.constant 0 : i32
    %c0_i32_0 = arith.constant 0 : i32
    %c0_i32_1 = arith.constant 0 : i32
    return %c0_i32, %c0_i32_0 : i32, i32
  }
  func.func @transform_4(%arg0: i32, %arg1: i32) -> (i32, i32, i32) {
    %c0_i32 = arith.constant 0 : i32
    %c0_i32_0 = arith.constant 0 : i32
    %c0_i32_1 = arith.constant 0 : i32
    return %arg0, %c0_i32, %c0_i32_0 : i32, i32, i32
  }
}

</mosaic_0001>

<bundles_post_ra>
// kernel: tpu_custom_call.1
= control target key start
LH: loop header
LB: loop body
LE: loop exit
PB: predicated region body
PF: predicated region fallthrough
CT: control target
= control target key end

     0   :  { %9 = vsyncpa [#allocation4], 0  ;;  %s1784_s0 = inlined_call_operand.vmem [shape: bf16[2,576,8], index: 0, kind: input, shape index: {}]   ;;  %s1785_s1 = inlined_call_operand.vmem [shape: bf16[8,32], index: 1, kind: input, shape index: {}]   ;;  %s1786_s2 = inlined_call_operand.vmem [shape: f32[1,32], index: 2, kind: input, shape index: {}]   ;;  %s1787_s3 = inlined_call_operand.vmem [shape: bf16[32,32], index: 3, kind: input, shape index: {}]   ;;  %s1788_s4 = inlined_call_operand.hbm [shape: f32[2,1,32], index: 4, kind: output, shape index: {}]  }
   0x1   :  { %11 = vsyncpa [#allocation4 + $0x1], 0  ;;  %s1541_s15 = smov 0   ;;  %s1543_s16 = smov 0  }
   0x2   :  { %s1545_s17 = smov 0   ;;  %s1547_s18 = smov 0  }
   0x3   :  { %s1549_s19 = smov 0   ;;  %s1551_s20 = smov 0  }
   0x4 LB: > { %s1164_s21 = sadd.s32 4294967295, %s1511_s20   ;;  %s1165_s22 = sadd.s32 4294967294, %s1511_s20   ;;  %s1511_s20 = sphi %s1551_s20, %s17_s20   ;;  %s1507_s19 = sphi %s1549_s19, %s1795_s19   ;;  %s1503_s18 = sphi %s1547_s18, %s1794_s18   ;;  %s1499_s17 = sphi %s1545_s17, %s1793_s17   ;;  %s1495_s16 = sphi %s1543_s16, %s1792_s16   ;;  %s1491_s15 = sphi %s1541_s15, %s1791_s15  }
   0x5   : > { %s29_s23 = sadd.s32 1, %s1507_s19  ;;  %s127_s24 = sadd.s32 1, %s1499_s17 }
   0x6   : > { %p31_p0 = scmp.ge.s32.totalorder %s29_s23, 2  ;;  %p137_p1 = scmp.ne.s32.totalorder %s1499_s17, %s1495_s16 }
   0x7   : > { %p138_p2 = scmp.eq.s32.totalorder %s1164_s21, 1  ;;  %p143_p3 = scmp.ne.s32.totalorder %s1495_s16, %s1491_s15 }
   0x8   : > { %s1797_s23 = smov (%p31_p0, %s29_s23), 0  ;;  %p144_p5 = scmp.eq.s32.totalorder %s1165_s22, 1 }
   0x9   : > { %p1581_p4 = por %p138_p2, %p137_p1  ;;  %s124_s26 = ssub.s32 %s1507_s19, %s1797_s23 }
   0xa   : > { %p1168_p6 = scmp.ge.s32.totalorder %s1511_s20, 1  ;;  %p125_p7 = scmp.eq.s32.totalorder %s124_s26, 0 }
   0xb   : > { %p1588_p8 = por %p144_p5, %p143_p3  ;;  %p184_p9 = scmp.lt.s32.totalorder %s1511_s20, 3 }
   0xc   : > { %s1594_s28 = scalar_select %p125_p7, %s1499_s17, %s127_s24  }
   0xd   : > { %p185_p10 = pnand %p1168_p6, %p184_p9 }
   0xe   : > { %p214_p11 = scmp.lt.s32.totalorder (!%p185_p10), %s1503_s18, 1  ;;  %s211_s22 = sand.u32 (!%p185_p10), 1, %s1495_s16  }
   0xf   : > { %188 = sbr.rel (%p185_p10) target bundleno = 606 (0x25e), region = 36  ;;  %s1174_s24 = sshll.u32 (!%p185_p10), %s1503_s18, 4 }
  0x10   : > { %s212_s26 = scalar_lea.vmem (!%p185_p10), [#allocation3], %s211_s22  ;;  %s1738_s6 = scalar_lea.hbm (!%p185_p10), %s1788_s4, %s1174_s24 }
  0x14   : > { %vm228_vm0 = vcmask 64512   ;;  %v1513_v0 = vmov 0.0   ;;  %s215_s29 = scalar_select %p214_p11, %s1503_s18, 1  ;;  %v969_v44 = vld [vmem:[%s1785_s1] sm:$0xf]  ;;  %vm974_vm1 = vcmask 1043456  }
  0x15   : > { %229 = vst.msk [vmem:[#allocation2] sm:$0xff] %vm228_vm0, %v1513_v0  ;;  %1361 = vmatprep.subr.bf16.mxu0 %v1513_v0  ;;  %1367 = vmatprep.subr.bf16.mxu1 %v1513_v0  ;;  %v976_v50 = vsel %vm974_vm1, %v969_v44, 0  ;;  %vm1514_vm2 = vmmov 0   ;;  %vm1036_vm3 = vcmask 261120   ;;  %vm1080_vm4 = vcmask 253952   ;;  %s1515_s18 = smov [#allocation3]  }
  0x16   : > { %s1375_s30 = smul.u32 288, %s215_s29  ;;  %1363 = vmatprep.mubr.msk.bf16.mxu0 %vm1514_vm2, %v1513_v0  ;;  %1371 = vmatprep.mubr.msk.bf16.mxu1 %vm1514_vm2, %v1513_v0  ;;  %s1095_s29 = sshll.u32 %s212_s26, 4  ;;  %s1740_s29 = int_to_ptr.vmem [resolvable:$true] %s1095_s29 }
  0x17   : > { %1362 = vmatpush3.bf16.msra.mxu0 %v976_v50  ;;  %s1435_s8 = scalar_lea.vmem %s1740_s29, 16  ;;  %s1439_s9 = sshll.u32 %s1515_s18, 4  ;;  %s1440_s9 = int_to_ptr.vmem [resolvable:$false] %s1439_s9 }
  0x18   : > { %s1605_s7 = scalar_lea.vmem %s1784_s0, %s1375_s30  ;;  %p1436_p12 = scmp.ne.s32.totalorder %s1740_s29, %s1435_s8 }
  0x19   : > { %v1178_v1 = vld [vmem:[%s1605_s7] sm:$0xff]   ;;  %v1321_v2 = vld [vmem:[%s1605_s7 + $0x8] sm:$0xff]   ;;  %v1322_v6 = vld [vmem:[%s1605_s7 + $0x10] sm:$0xff]   ;;  %s1441_s10 = scalar_lea.vmem %s1440_s9, 32  ;;  %p1442_p1 = scmp.lt.s32.totalorder %s1740_s29, %s1440_s9 }
  0x1a   : > { %v1179_v3 = vunpack.c.l.bf16 %v1178_v1  ;;  %v1180_v4 = vunpack.c.h.bf16 %v1178_v1  ;;  %v1183_v5 = vunpack.c.l.bf16 %v1321_v2  ;;  %v1184_v7 = vunpack.c.h.bf16 %v1321_v2  ;;  %v1323_v12 = vld [vmem:[%s1605_s7 + $0x18] sm:$0xff]   ;;  %v1324_v19 = vld [vmem:[%s1605_s7 + $0x20] sm:$0xff]   ;;  %v1325_v26 = vld [vmem:[%s1605_s7 + $0x28] sm:$0xff]   ;;  %p1437_p13 = pnand %p1436_p12, %p1581_p4  ;;  %p1443_p2 = scmp.lt.s32.totalorder %s1441_s10, %s1435_s8 }
  0x1b   : > { %v1187_v8 = vunpack.c.l.bf16 %v1322_v6  ;;  %v1188_v14 = vunpack.c.h.bf16 %v1322_v6  ;;  %v1191_v17 = vunpack.c.l.bf16 %v1323_v12  ;;  %v1192_v21 = vunpack.c.h.bf16 %v1323_v12  ;;  %v1326_v33 = vld [vmem:[%s1605_s7 + $0x30] sm:$0xff]   ;;  %v1327_v40 = vld [vmem:[%s1605_s7 + $0x38] sm:$0xff]   ;;  %v1328_v48 = vld [vmem:[%s1605_s7 + $0x40] sm:$0xff]  }
  0x1c   : > { %v811_v9 = vsel %vm228_vm0, %v1179_v3, 0.0  ;;  %v812_v10 = vsel %vm228_vm0, %v1180_v4, 0.0  ;;  %v814_v11 = vsel %vm228_vm0, %v1183_v5, 0.0  ;;  %v816_v15 = vsel %vm228_vm0, %v1184_v7, 0.0  ;;  %v1329_v56 = vld [vmem:[%s1605_s7 + $0x48] sm:$0xff]   ;;  %v1330_v63 = vld [vmem:[%s1605_s7 + $0x50] sm:$0xff]   ;;  %p1438_p0 = pneg %p1437_p13  ;;  %p1444_p3 = por %p1443_p2, %p1442_p1 }
  0x1d   : > { %v813_v13 = vadd.f32 %v812_v10, %v811_v9  ;;  %v818_v18 = vsel %vm228_vm0, %v1187_v8, 0.0  ;;  %v820_v22 = vsel %vm228_vm0, %v1188_v14, 0.0  ;;  %v1195_v24 = vunpack.c.l.bf16 %v1324_v19  ;;  %v1331_v7 = vld [vmem:[%s1605_s7 + $0x58] sm:$0xff]   ;;  %v1332_v14 = vld [vmem:[%s1605_s7 + $0x60] sm:$0xff]  }
  0x1e   : > { %v822_v25 = vsel %vm228_vm0, %v1191_v17, 0.0  ;;  %v1196_v28 = vunpack.c.h.bf16 %v1324_v19  ;;  %v824_v29 = vsel %vm228_vm0, %v1192_v21, 0.0  ;;  %v1199_v31 = vunpack.c.l.bf16 %v1325_v26  ;;  %v1333_v21 = vld [vmem:[%s1605_s7 + $0x68] sm:$0xff]   ;;  %p1445_p5 = pnand %p1444_p3, %p1438_p0 }
  0x1f   : > { %v815_v16 = vadd.f32 %v814_v11, %v813_v13  ;;  %v826_v32 = vsel %vm228_vm0, %v1195_v24, 0.0  ;;  %v1200_v35 = vunpack.c.h.bf16 %v1325_v26  ;;  %v1203_v38 = vunpack.c.l.bf16 %v1326_v33 }
  0x20   : > { %v828_v36 = vsel %vm228_vm0, %v1196_v28, 0.0  ;;  %v830_v39 = vsel %vm228_vm0, %v1199_v31, 0.0  ;;  %v1204_v42 = vunpack.c.h.bf16 %v1326_v33  ;;  %v1207_v46 = vunpack.c.l.bf16 %v1327_v40  ;;  %v1334_v28 = vld [vmem:[%s1605_s7 + $0x70] sm:$0xff]  }
  0x21   : > { %v817_v20 = vadd.f32 %v816_v15, %v815_v16  ;;  %v832_v43 = vsel %vm228_vm0, %v1200_v35, 0.0  ;;  %v834_v47 = vsel %vm228_vm0, %v1203_v38, 0.0  ;;  %v1208_v51 = vunpack.c.h.bf16 %v1327_v40  ;;  %v1335_v35 = vld [vmem:[%s1605_s7 + $0x78] sm:$0xff]  }
  0x22   : > { %v836_v52 = vsel %vm228_vm0, %v1204_v42, 0.0  ;;  %v1211_v54 = vunpack.c.l.bf16 %v1328_v48  ;;  %v838_v55 = vsel %vm228_vm0, %v1207_v46, 0.0  ;;  %v1212_v58 = vunpack.c.h.bf16 %v1328_v48  ;;  %v1336_v42 = vld [vmem:[%s1605_s7 + $0x80] sm:$0xff]  }
  0x23   : > { %v819_v23 = vadd.f32 %v818_v18, %v817_v20  ;;  %v840_v59 = vsel %vm228_vm0, %v1208_v51, 0.0  ;;  %v1215_v61 = vunpack.c.l.bf16 %v1329_v56  ;;  %v1216_v2 = vunpack.c.h.bf16 %v1329_v56  ;;  %v1338_v56 = vld [vmem:[%s1605_s7 + $0x90] sm:$0xff]  }
  0x24   : > { %v842_v62 = vsel %vm228_vm0, %v1211_v54, 0.0  ;;  %v844_v3 = vsel %vm228_vm0, %v1212_v58, 0.0  ;;  %v1219_v5 = vunpack.c.l.bf16 %v1330_v63  ;;  %v1220_v9 = vunpack.c.h.bf16 %v1330_v63  ;;  %v1339_v63 = vld [vmem:[%s1605_s7 + $0x98] sm:$0xff]  }
  0x25   : > { %v821_v27 = vadd.f32 %v820_v22, %v819_v23  ;;  %v846_v6 = vsel %vm228_vm0, %v1215_v61, 0.0  ;;  %v848_v10 = vsel %vm228_vm0, %v1216_v2, 0.0  ;;  %v1223_v12 = vunpack.c.l.bf16 %v1331_v7 }
  0x26   : > { %v850_v13 = vsel %vm228_vm0, %v1219_v5, 0.0  ;;  %v1224_v16 = vunpack.c.h.bf16 %v1331_v7  ;;  %v852_v17 = vsel %vm228_vm0, %v1220_v9, 0.0  ;;  %v1227_v19 = vunpack.c.l.bf16 %v1332_v14  ;;  %v1340_v7 = vld [vmem:[%s1605_s7 + $0xa0] sm:$0xff]  }
  0x27   : > { %v823_v30 = vadd.f32 %v822_v25, %v821_v27  ;;  %v854_v20 = vsel %vm228_vm0, %v1223_v12, 0.0  ;;  %v1228_v23 = vunpack.c.h.bf16 %v1332_v14  ;;  %v1231_v26 = vunpack.c.l.bf16 %v1333_v21  ;;  %v1341_v14 = vld [vmem:[%s1605_s7 + $0xa8] sm:$0xff]  }
  0x28   : > { %v856_v24 = vsel %vm228_vm0, %v1224_v16, 0.0  ;;  %v858_v27 = vsel %vm228_vm0, %v1227_v19, 0.0  ;;  %v1235_v33 = vunpack.c.l.bf16 %v1334_v28  ;;  %v1239_v40 = vunpack.c.l.bf16 %v1335_v35 }
  0x29   : > { %v825_v34 = vadd.f32 %v824_v29, %v823_v30  ;;  %v1232_v30 = vunpack.c.h.bf16 %v1333_v21  ;;  %v860_v31 = vsel %vm228_vm0, %v1228_v23, 0.0  ;;  %v1240_v44 = vunpack.c.h.bf16 %v1335_v35  ;;  %v1342_v21 = vld [vmem:[%s1605_s7 + $0xb0] sm:$0xff]   ;;  %v1344_v35 = vld [vmem:[%s1605_s7 + $0xc0] sm:$0xff]  }
  0x2a   : > { %v870_v48 = vsel %vm228_vm0, %v1239_v40, 0.0  ;;  %v1244_v51 = vunpack.c.h.bf16 %v1336_v42  ;;  %v1251_v61 = vunpack.c.l.bf16 %v1338_v56  ;;  %v1252_v2 = vunpack.c.h.bf16 %v1338_v56  ;;  %v1347_v56 = vld [vmem:[%s1605_s7 + $0xd8] sm:$0xff]  }
  0x2b   : > { %v827_v37 = vadd.f32 %v826_v32, %v825_v34  ;;  %v862_v34 = vsel %vm228_vm0, %v1231_v26, 0.0  ;;  %v864_v38 = vsel %vm228_vm0, %v1232_v30, 0.0  ;;  %v1255_v5 = vunpack.c.l.bf16 %v1339_v63 }
  0x2c   : > { %v1256_v9 = vunpack.c.h.bf16 %v1339_v63  ;;  %v1259_v12 = vunpack.c.l.bf16 %v1340_v7  ;;  %v1260_v16 = vunpack.c.h.bf16 %v1340_v7  ;;  %v1263_v19 = vunpack.c.l.bf16 %v1341_v14  ;;  %v1348_v63 = vld [vmem:[%s1605_s7 + $0xe0] sm:$0xff]   ;;  %v1349_v7 = vld [vmem:[%s1605_s7 + $0xe8] sm:$0xff]  }
  0x2d   : > { %v829_v41 = vadd.f32 %v828_v36, %v827_v37  ;;  %v1236_v37 = vunpack.c.h.bf16 %v1334_v28  ;;  %v1264_v23 = vunpack.c.h.bf16 %v1341_v14  ;;  %v1267_v26 = vunpack.c.l.bf16 %v1342_v21  ;;  %v1343_v28 = vld [vmem:[%s1605_s7 + $0xb8] sm:$0xff]   ;;  %v1350_v14 = vld [vmem:[%s1605_s7 + $0xf0] sm:$0xff]  }
  0x2e   : > { %v1268_v30 = vunpack.c.h.bf16 %v1342_v21  ;;  %v1275_v40 = vunpack.c.l.bf16 %v1344_v35  ;;  %v1351_v21 = vld [vmem:[%s1605_s7 + $0xf8] sm:$0xff]  }
  0x2f   : > { %v831_v45 = vadd.f32 %v830_v39, %v829_v41  ;;  %v866_v41 = vsel %vm228_vm0, %v1235_v33, 0.0  ;;  %v1271_v33 = vunpack.c.l.bf16 %v1343_v28 }
  0x31   : > { %v833_v49 = vadd.f32 %v832_v43, %v831_v45  ;;  %v868_v45 = vsel %vm228_vm0, %v1236_v37, 0.0  ;;  %v1272_v37 = vunpack.c.h.bf16 %v1343_v28  ;;  %v1352_v28 = vld [vmem:[%s1605_s7 + $0x100] sm:$0xff]  }
  0x33   : > { %v835_v53 = vadd.f32 %v834_v47, %v833_v49  ;;  %v1243_v47 = vunpack.c.l.bf16 %v1336_v42  ;;  %v1337_v49 = vld [vmem:[%s1605_s7 + $0x88] sm:$0xff]  }
  0x34   : > { %v1247_v54 = vunpack.c.l.bf16 %v1337_v49  ;;  %v1248_v58 = vunpack.c.h.bf16 %v1337_v49  ;;  %v1345_v42 = vld [vmem:[%s1605_s7 + $0xc8] sm:$0xff]   ;;  %v1346_v49 = vld [vmem:[%s1605_s7 + $0xd0] sm:$0xff]  }
  0x35   : > { %v837_v57 = vadd.f32 %v836_v52, %v835_v53  ;;  %v872_v52 = vsel %vm228_vm0, %v1240_v44, 0.0  ;;  %v1276_v44 = vunpack.c.h.bf16 %v1344_v35  ;;  %v1353_v35 = vld [vmem:[%s1605_s7 + $0x108] sm:$0xff]  }
  0x37   : > { %v839_v60 = vadd.f32 %v838_v55, %v837_v57  ;;  %v874_v55 = vsel %vm228_vm0, %v1243_v47, 0.0  ;;  %v1279_v47 = vunpack.c.l.bf16 %v1345_v42 }
  0x39   : > { %v841_v1 = vadd.f32 %v840_v59, %v839_v60  ;;  %v876_v59 = vsel %vm228_vm0, %v1244_v51, 0.0  ;;  %v1280_v51 = vunpack.c.h.bf16 %v1345_v42  ;;  %v1354_v42 = vld [vmem:[%s1605_s7 + $0x110] sm:$0xff]  }
  0x3b   : > { %v843_v4 = vadd.f32 %v842_v62, %v841_v1  ;;  %v878_v62 = vsel %vm228_vm0, %v1247_v54, 0.0  ;;  %v1283_v54 = vunpack.c.l.bf16 %v1346_v49 }
  0x3d   : > { %v845_v8 = vadd.f32 %v844_v3, %v843_v4  ;;  %v880_v3 = vsel %vm228_vm0, %v1248_v58, 0.0  ;;  %v1284_v58 = vunpack.c.h.bf16 %v1346_v49  ;;  %v1355_v49 = vld [vmem:[%s1605_s7 + $0x118] sm:$0xff]   ;;  %s1083_s7 = scalar_lea.sflag [#allocation4], %s211_s22 }
  0x3f   : > { %v847_v11 = vadd.f32 %v846_v6, %v845_v8  ;;  %v882_v6 = vsel %vm228_vm0, %v1251_v61, 0.0  ;;  %v1287_v61 = vunpack.c.l.bf16 %v1347_v56 }
  0x41   : > { %v849_v15 = vadd.f32 %v848_v10, %v847_v11  ;;  %v884_v10 = vsel %vm228_vm0, %v1252_v2, 0.0  ;;  %v1288_v2 = vunpack.c.h.bf16 %v1347_v56 }
  0x43   : > { %v851_v18 = vadd.f32 %v850_v13, %v849_v15  ;;  %v886_v13 = vsel %vm228_vm0, %v1255_v5, 0.0  ;;  %v1291_v5 = vunpack.c.l.bf16 %v1348_v63 }
  0x45   : > { %v853_v22 = vadd.f32 %v852_v17, %v851_v18  ;;  %v888_v17 = vsel %vm228_vm0, %v1256_v9, 0.0  ;;  %v1292_v9 = vunpack.c.h.bf16 %v1348_v63 }
  0x47   : > { %v855_v25 = vadd.f32 %v854_v20, %v853_v22  ;;  %v890_v20 = vsel %vm228_vm0, %v1259_v12, 0.0  ;;  %v1295_v12 = vunpack.c.l.bf16 %v1349_v7 }
  0x49   : > { %v857_v29 = vadd.f32 %v856_v24, %v855_v25  ;;  %v892_v24 = vsel %vm228_vm0, %v1260_v16, 0.0  ;;  %v1296_v16 = vunpack.c.h.bf16 %v1349_v7 }
  0x4b   : > { %v859_v32 = vadd.f32 %v858_v27, %v857_v29  ;;  %v894_v27 = vsel %vm228_vm0, %v1263_v19, 0.0  ;;  %v1299_v19 = vunpack.c.l.bf16 %v1350_v14 }
  0x4d   : > { %v861_v36 = vadd.f32 %v860_v31, %v859_v32  ;;  %v896_v31 = vsel %vm228_vm0, %v1264_v23, 0.0  ;;  %v1300_v23 = vunpack.c.h.bf16 %v1350_v14  ;;  %v1433_v14 = vld [vmem:[%s1787_s3 + $0x8] sm:$0xff]  }
  0x4e   : > { %1368 = vmatpush3.bf16.msra.mxu1 %v1433_v14 }
  0x4f   : > { %v863_v39 = vadd.f32 %v862_v34, %v861_v36  ;;  %v898_v34 = vsel %vm228_vm0, %v1267_v26, 0.0  ;;  %v1303_v26 = vunpack.c.l.bf16 %v1351_v21  ;;  %1369 = vmatprep.subr.bf16.mxu1 %v1513_v0 }
  0x51   : > { %v865_v43 = vadd.f32 %v864_v38, %v863_v39  ;;  %v900_v38 = vsel %vm228_vm0, %v1268_v30, 0.0  ;;  %v1304_v30 = vunpack.c.h.bf16 %v1351_v21 }
  0x53   : > { %v867_v46 = vadd.f32 %v866_v41, %v865_v43  ;;  %v902_v41 = vsel %vm228_vm0, %v1271_v33, 0.0  ;;  %v1307_v33 = vunpack.c.l.bf16 %v1352_v28 }
  0x55   : > { %v869_v50 = vadd.f32 %v868_v45, %v867_v46  ;;  %v904_v45 = vsel %vm228_vm0, %v1272_v37, 0.0  ;;  %v1308_v37 = vunpack.c.h.bf16 %v1352_v28 }
  0x57   : > { %v871_v53 = vadd.f32 %v870_v48, %v869_v50  ;;  %v906_v48 = vsel %vm228_vm0, %v1275_v40, 0.0  ;;  %v1311_v40 = vunpack.c.l.bf16 %v1353_v35 }
  0x59   : > { %v873_v57 = vadd.f32 %v872_v52, %v871_v53  ;;  %v908_v52 = vsel %vm228_vm0, %v1276_v44, 0.0  ;;  %v1312_v44 = vunpack.c.h.bf16 %v1353_v35 }
  0x5b   : > { %v875_v60 = vadd.f32 %v874_v55, %v873_v57  ;;  %v910_v55 = vsel %vm228_vm0, %v1279_v47, 0.0  ;;  %v1315_v47 = vunpack.c.l.bf16 %v1354_v42 }
  0x5d   : > { %v877_v1 = vadd.f32 %v876_v59, %v875_v60  ;;  %v912_v59 = vsel %vm228_vm0, %v1280_v51, 0.0  ;;  %v1316_v51 = vunpack.c.h.bf16 %v1354_v42 }
  0x5f   : > { %v879_v4 = vadd.f32 %v878_v62, %v877_v1  ;;  %v914_v62 = vsel %vm228_vm0, %v1283_v54, 0.0  ;;  %v1319_v54 = vunpack.c.l.bf16 %v1355_v49 }
  0x61   : > { %v881_v8 = vadd.f32 %v880_v3, %v879_v4  ;;  %v916_v3 = vsel %vm228_vm0, %v1284_v58, 0.0  ;;  %v948_v58 = vsel %vm228_vm0, %v1316_v51, 0.0 }
  0x63   : > { %v883_v11 = vadd.f32 %v882_v6, %v881_v8  ;;  %v918_v6 = vsel %vm228_vm0, %v1287_v61, 0.0 }
  0x65   : > { %v885_v15 = vadd.f32 %v884_v10, %v883_v11  ;;  %v920_v10 = vsel %vm228_vm0, %v1288_v2, 0.0 }
  0x67   : > { %v887_v18 = vadd.f32 %v886_v13, %v885_v15  ;;  %v922_v13 = vsel %vm228_vm0, %v1291_v5, 0.0 }
  0x69   : > { %v889_v22 = vadd.f32 %v888_v17, %v887_v18  ;;  %v924_v17 = vsel %vm228_vm0, %v1292_v9, 0.0 }
  0x6b   : > { %v891_v25 = vadd.f32 %v890_v20, %v889_v22  ;;  %v926_v20 = vsel %vm228_vm0, %v1295_v12, 0.0 }
  0x6d   : > { %v893_v29 = vadd.f32 %v892_v24, %v891_v25  ;;  %v928_v24 = vsel %vm228_vm0, %v1296_v16, 0.0  ;;  %v970_v16 = vld [vmem:[%s1786_s2] sm:$0x1] }
  0x6f   : > { %v895_v32 = vadd.f32 %v894_v27, %v893_v29  ;;  %v930_v27 = vsel %vm228_vm0, %v1299_v19, 0.0 }
  0x71   : > { %v897_v36 = vadd.f32 %v896_v31, %v895_v32  ;;  %v932_v31 = vsel %vm228_vm0, %v1300_v23, 0.0 }
  0x73   : > { %v899_v39 = vadd.f32 %v898_v34, %v897_v36  ;;  %v934_v34 = vsel %vm228_vm0, %v1303_v26, 0.0 }
  0x75   : > { %v901_v43 = vadd.f32 %v900_v38, %v899_v39  ;;  %v936_v38 = vsel %vm228_vm0, %v1304_v30, 0.0 }
  0x77   : > { %v903_v46 = vadd.f32 %v902_v41, %v901_v43  ;;  %v938_v41 = vsel %vm228_vm0, %v1307_v33, 0.0 }
  0x79   : > { %v905_v50 = vadd.f32 %v904_v45, %v903_v46  ;;  %v940_v45 = vsel %vm228_vm0, %v1308_v37, 0.0 }
  0x7b   : > { %v907_v53 = vadd.f32 %v906_v48, %v905_v50  ;;  %v942_v48 = vsel %vm228_vm0, %v1311_v40, 0.0 }
  0x7d   : > { %v909_v57 = vadd.f32 %v908_v52, %v907_v53  ;;  %v944_v52 = vsel %vm228_vm0, %v1312_v44, 0.0 }
  0x7f   : > { %v911_v60 = vadd.f32 %v910_v55, %v909_v57  ;;  %v946_v55 = vsel %vm228_vm0, %v1315_v47, 0.0  ;;  %v1320_v57 = vunpack.c.h.bf16 %v1355_v49 }
  0x81   : > { %v913_v1 = vadd.f32 %v912_v59, %v911_v60  ;;  %v950_v60 = vsel %vm228_vm0, %v1319_v54, 0.0 }
  0x83   : > { %v915_v4 = vadd.f32 %v914_v62, %v913_v1  ;;  %v952_v62 = vsel %vm228_vm0, %v1320_v57, 0.0  ;;  %v809_v1 = vld [vmem:[#allocation2] sm:$0xff] }
  0x85   : > { %v917_v8 = vadd.f32 %v916_v3, %v915_v4 }
  0x87   : > { %v919_v11 = vadd.f32 %v918_v6, %v917_v8 }
  0x89   : > { %v921_v15 = vadd.f32 %v920_v10, %v919_v11 }
  0x8b   : > { %v923_v18 = vadd.f32 %v922_v13, %v921_v15  ;;  %v1434_v15 = vld [vmem:[%s1787_s3] sm:$0xff]  }
  0x8c   : > { %1370 = vmatpush3.bf16.msra.mxu1 %v1434_v15 }
  0x8d   : > { %v925_v22 = vadd.f32 %v924_v17, %v923_v18 }
  0x8f   : > { %v927_v25 = vadd.f32 %v926_v20, %v925_v22 }
  0x91   : > { %v929_v29 = vadd.f32 %v928_v24, %v927_v25 }
  0x93   : > { %v931_v32 = vadd.f32 %v930_v27, %v929_v29 }
  0x95   : > { %v933_v36 = vadd.f32 %v932_v31, %v931_v32 }
  0x97   : > { %v935_v39 = vadd.f32 %v934_v34, %v933_v36 }
  0x99   : > { %v937_v43 = vadd.f32 %v936_v38, %v935_v39 }
  0x9b   : > { %v939_v46 = vadd.f32 %v938_v41, %v937_v43 }
  0x9d   : > { %v941_v50 = vadd.f32 %v940_v45, %v939_v46 }
  0x9f   : > { %v943_v53 = vadd.f32 %v942_v48, %v941_v50 }
  0xa1   : > { %v945_v56 = vadd.f32 %v944_v52, %v943_v53 }
  0xa3   : > { %v947_v59 = vadd.f32 %v946_v55, %v945_v56 }
  0xa5   : > { %v949_v61 = vadd.f32 %v948_v58, %v947_v59 }
  0xa7   : > { %v951_v63 = vadd.f32 %v950_v60, %v949_v61 }
  0xa9   : > { %v953_v2 = vadd.f32 %v952_v62, %v951_v63 }
  0xab   : > { %v954_v3 = vadd.f32 %v953_v2, %v809_v1 }
  0xad   : > { %955 = vst.msk [vmem:[#allocation2] sm:$0xff] %vm228_vm0, %v954_v3 }
  0xb4   : > { %v959_v4 = vld [vmem:[#allocation2] sm:$0xff] }
  0xb5   : > { %v960_v5 = vsel %vm228_vm0, %v959_v4, 0.0 }
  0xb6   : > { %v961_v6 = vrot.slane %v960_v5, 4 }
  0xb8   : > { %v962_v7 = vadd.f32 %v961_v6, %v960_v5 }
  0xba   : > { %v963_v8 = vrot.slane %v962_v7, 2 }
  0xbc   : > { %v964_v9 = vadd.f32 %v963_v8, %v962_v7 }
  0xbe   : > { %v965_v10 = vrot.slane %v964_v9, 1 }
  0xc0   : > { %v966_v11 = vadd.f32 %v965_v10, %v964_v9 }
  0xc2   : > { %v967_v12 = vmul.f32 0.00390625, %v966_v11 }
  0xc4   : > { %v968_v13 = vpack.c.bf16 %v967_v12, %v967_v12 }
  0xc6   : > { %1364 = vmatmul.mubr.msk.bf16.vlgmr.msra.gmra.mxu0 %vm228_vm0, %v968_v13 }
 0x186   : > { %v1012_v17 = vpop.f32.mrf.mxu0 }
 0x187   : > { %v1013_v18 = vadd.f32 %v1012_v17, %v970_v16 }
 0x188   : > { %v1365_v19 = vpop.f32.mrf.mxu0 }
 0x189   : > { %v1018_v20 = vmax.f32 %v1013_v18, 0.0 }
 0x18a   : > { %v1015_v21 = vpop.f32.mrf.mxu0 }
 0x18b   : > { %v1019_v22 = vpack.c.bf16 %v1018_v20, %v1018_v20 }
 0x18c   : > { %v1366_v23 = vpop.f32.mrf.mxu0 }
 0x18d   : > { %1372 = vmatmul.mubr.msk.bf16.vlgmr.msra.gmra.mxu1 %vm1036_vm3, %v1019_v22 }
 0x24d   : > { %v1074_v0 = vpop.f32.mrf.mxu1 }
 0x24e   : > { %1081 = vst.msk [vmem:[%s212_s26] sm:$0x1] %vm1080_vm4, %v1074_v0 }
 0x24f   : > { %v1373_v24 = vpop.f32.mrf.mxu1 }
 0x250   : > { %1448 = shalt.err (!%p1445_p5)
}
 0x251   : > { %s1449_s11 = scalar_lea.hbm %s1738_s6, 16  ;;  %s1453_s14 = scalar_lea.hbm %s1788_s4, 32 }
 0x252   : > { %p1450_p6 = scmp.ne.s32.totalorder %s1738_s6, %s1449_s11  ;;  %p1454_p10 = scmp.lt.s32.totalorder %s1738_s6, %s1788_s4 }
 0x253   : > { %p1455_p11 = scmp.lt.s32.totalorder %s1453_s14, %s1449_s11 }
 0x254   : > { %p1451_p7 = pnand %p1450_p6, %p1581_p4 }
 0x255   : > { %p1456_p12 = por %p1455_p11, %p1454_p10 }
 0x256   : > { %p1452_p9 = pneg %p1451_p7 }
 0x258   : > { %p1457_p13 = pnand %p1456_p12, %p1452_p9 }
 0x25a   : > { %1460 = shalt.err (!%p1457_p13)
}
 0x25b   : > { %1376 = dma.vmem_to_hbm [thread:$0]  (%p1581_p4), %s1740_s29, 16, %s1738_s6, %s1083_s7   ;;  %v1077_v25 = vpop.f32.mrf.mxu1 }
 0x25d   : > { %v1374_v26 = vpop.f32.mrf.mxu1 }
 0x25e PF: > { %p1382_p0 = scmp.ge.s32.totalorder %s1511_s20, 2  ;;  %s1107_s24 = sand.u32 1, %s1491_s15  }
 0x25f   : > { %s1108_s26 = scalar_lea.sflag [#allocation4], %s1107_s24 }
 0x260   : > { %p1379_p1 = pnand %p1382_p0, %p1588_p8 }
 0x262   : > { %p1380_p2 = pneg %p1379_p1 }
 0x264   : > { %1486 = dma.done.wait (%p1380_p2), %s1108_s26, 16  }
 0x265   : > { %1488 = vsyncadd (%p1380_p2), %s1108_s26, 4294967280  ;;  %s17_s20 = sadd.s32 1, %s1511_s20   ;;  %s1791_s15 = smov %s1495_s16 }
 0x266   : > { %p14_p3 = scmp.ge.s32.totalorder %s17_s20, 4   ;;  %s1792_s16 = smov %s1499_s17 }
 0x267   : > { %s1793_s17 = smov %s1594_s28  ;;  %s1794_s18 = smov %s1507_s19 }
 0x268   : > { %s1795_s19 = smov %s1797_s23  ;;  %16 = sbr.rel (!%p14_p3) target bundleno = 4 (0x4), region = 79 }
 0x26d   :  { %1112 = vsyncpa [#allocation4], 1 }
 0x26e   :  { %1114 = vsyncpa [#allocation4 + $0x1], 1 }

</bundles_post_ra>
